<compile_context>
chip_gen: v7x
topology: tpu7x:2x2x1
jax: 0.10.0
libtpu: 0.0.40
codegen_flags: <defaults>
</compile_context>

<pallas_src>
import jax
import jax.numpy as jnp
from jax.experimental import pallas as pl
from jax.experimental.pallas import tpu as pltpu


def _embed_kernel(x_ref, w_ref, bp_ref, cls_ref, o_ref):
    # x_ref:   (1, C, TN, P)    bf16, streamed per grid step
    # w_ref:   (C*P, D_lat)     bf16, resident (constant block)
    # bp_ref:  (1, 1, D_lat)    f32,  bias + pos_embedding for this batch
    # cls_ref: (1, 1, D_lat)    f32,  class_token + pos_embedding for this batch
    # o_ref:   (1, N+1, D_lat)  resident per batch across the tile axis
    _, C, TN, P = x_ref.shape
    nt = pl.program_id(1)

    # Fused patch extraction: lane-concat the C channel slices into (TN, C*P)
    # patch rows (cheap, rides VPU/XLU slack), then ONE K=C*P MXU matmul with
    # f32 accumulation — replaces C separate K=P matmuls + C-1 accumulator adds.
    xm = jnp.concatenate([x_ref[0, c, :, :] for c in range(C)], axis=-1)
    proj = jnp.dot(xm, w_ref[...], preferred_element_type=jnp.float32)  # (TN, D_lat)
    proj = proj + bp_ref[0, :, :]                                        # f32 adds

    # Class-token row: written once per batch, outside the per-tile hot path.
    @pl.when(nt == 0)
    def _():
        o_ref[0, 0:1, :] = cls_ref[0, :, :].astype(o_ref.dtype)

    # Projected rows land directly at their +1 sequence offset.
    o_ref[0, pl.ds(1 + nt * TN, TN), :] = proj.astype(o_ref.dtype)


def input_embedding(x, weight_t, bias, class_token, pos_embedding, patch_size,
                    tile_n=256):
    """x: (B, C, L). Returns (B, N+1, latent), matching PyTorch InputEmbedding."""
    B, C, L = x.shape
    P = patch_size
    assert L % P == 0
    N = L // P
    D_in = C * P
    D_lat = weight_t.shape[1]
    assert weight_t.shape == (D_in, D_lat)
    # The PyTorch module uses per-batch class_token / pos_embedding of shape
    # (B, 1, D_lat) (same positional vector at every sequence position); the
    # bias+pos / cls+pos pre-fold below relies on exactly that shape.
    assert class_token.shape == (B, 1, D_lat), class_token.shape
    assert pos_embedding.shape == (B, 1, D_lat), pos_embedding.shape

    # Row-tile over the sequence; x blocks stream through double-buffered VMEM.
    TN = min(N, tile_n)
    assert N % TN == 0  # TODO(synk): ragged last tile via masked rows
    n_tiles = N // TN

    # VMEM budget (v7x: 64 MiB physical / 32 MiB scoped): double-buffered x
    # tiles + resident weight + per-batch output slab must fit with headroom.
    vmem_bytes = (2 * C * TN * P * 2          # x tiles (bf16, double buffered)
                  + D_in * D_lat * 2          # weight (bf16, resident)
                  + 2 * (N + 1) * D_lat * 4   # output slab (double buffered)
                  + 4 * 2 * D_lat * 4)        # bias/cls blocks
    assert vmem_bytes < 24 * 1024 * 1024, "shrink tile_n for this shape"

    # Free reshape (pure metadata, no transpose, no extra HBM round trip), then
    # feed the MXU in bf16; accumulation and the bias/pos adds stay f32.
    x4 = x.reshape(B, C, N, P).astype(jnp.bfloat16)
    w = weight_t.astype(jnp.bfloat16)

    pos = pos_embedding[:, 0, :].astype(jnp.float32)                        # (B, D)
    bias_pos = (bias.astype(jnp.float32)[None, :] + pos)[:, None, :]        # (B,1,D)
    cls_pos = (class_token[:, 0, :].astype(jnp.float32) + pos)[:, None, :]  # (B,1,D)

    cost = pl.CostEstimate(
        flops=2 * B * N * D_in * D_lat,
        transcendentals=0,
        bytes_accessed=(x4.size * x4.dtype.itemsize
                        + w.size * w.dtype.itemsize
                        + bias_pos.size * 4 + cls_pos.size * 4
                        + B * (N + 1) * D_lat * x.dtype.itemsize),
    )

    # TODO(synk): at real ViT sizes, pad D_lat to a multiple of 128 (lane-dense
    # unmasked stores) and pick TN as a multiple of 256 for full MXU passes.
    return pl.pallas_call(
        _embed_kernel,
        out_shape=jax.ShapeDtypeStruct((B, N + 1, D_lat), x.dtype),
        grid_spec=pltpu.PrefetchScalarGridSpec(
            num_scalar_prefetch=0,
            grid=(B, n_tiles),
            in_specs=[
                # x rows stream (double-buffered); everything else stays resident.
                pl.BlockSpec((1, C, TN, P), lambda b, nt: (b, 0, nt, 0)),
                pl.BlockSpec((D_in, D_lat), lambda b, nt: (0, 0)),
                pl.BlockSpec((1, 1, D_lat), lambda b, nt: (b, 0, 0)),
                pl.BlockSpec((1, 1, D_lat), lambda b, nt: (b, 0, 0)),
            ],
            out_specs=pl.BlockSpec((1, N + 1, D_lat), lambda b, nt: (b, 0, 0)),
        ),
        compiler_params=pltpu.CompilerParams(
            # Batch axis shards across v7x's two TensorCores; the tile axis
            # revisits the per-batch output slab, so it must be "arbitrary".
            dimension_semantics=("parallel", "arbitrary"),
            vmem_limit_bytes=32 * 1024 * 1024,
        ),
        cost_estimate=cost,
    )(x4, w, bias_pos, cls_pos)


def reference(x, weight_t, bias, class_token, pos_embedding, patch_size):
    """Matched-precision reference (bf16 matmul operands, f32 accumulate/adds)."""
    B, C, L = x.shape
    N = L // patch_size
    patches = x.reshape(B, C, N, patch_size)
    patches = jnp.transpose(patches, (0, 2, 1, 3)).reshape(B, N, C * patch_size)
    proj = jnp.dot(patches.astype(jnp.bfloat16), weight_t.astype(jnp.bfloat16),
                   preferred_element_type=jnp.float32) + bias
    out = jnp.concatenate([class_token, proj], axis=1)     # (B, N+1, D_lat)
    out = out + pos_embedding                               # broadcast over seq
    return out


if __name__ == "__main__":
    # args: patch_size=8, n_channels=4, latent_size=32, batch_size=2, length=64
    patch_size = 8
    n_channels = 4
    latent_size = 32
    batch_size = 2
    length = 64
    input_size = patch_size * n_channels  # 32

    key = jax.random.PRNGKey(0)
    k_x, k_w, k_b, k_cls, k_pos = jax.random.split(key, 5)

    x = jax.random.normal(k_x, (batch_size, n_channels, length), dtype=jnp.float32)

    # nn.Linear(input_size, latent_size): weight (latent, input) -> store transposed
    bound = 1.0 / (input_size ** 0.5)
    weight_t = jax.random.uniform(k_w, (input_size, latent_size),
                                  minval=-bound, maxval=bound, dtype=jnp.float32)
    bias = jax.random.uniform(k_b, (latent_size,),
                              minval=-bound, maxval=bound, dtype=jnp.float32)
    class_token = jax.random.normal(k_cls, (batch_size, 1, latent_size),
                                    dtype=jnp.float32)
    pos_embedding = jax.random.normal(k_pos, (batch_size, 1, latent_size),
                                      dtype=jnp.float32)

    emb = jax.jit(input_embedding, static_argnames=("patch_size", "tile_n"))
    out = emb(x, weight_t, bias, class_token, pos_embedding, patch_size=patch_size)
    out = jax.block_until_ready(out)

    ref = reference(x, weight_t, bias, class_token, pos_embedding, patch_size)
    assert out.shape == (batch_size, length // patch_size + 1, latent_size)
    assert jnp.allclose(out, ref, atol=2e-2, rtol=2e-2), \
        float(jnp.max(jnp.abs(out - ref)))

    print("KERNEL_OK")
</pallas_src>

<mosaic_0001>
module attributes {stable_mosaic.version = 11 : i64} {
  func.func @_embed_kernel(%arg0: i32, %arg1: i32, %arg2: memref<1x4x8x8xbf16, #tpu.memory_space<vmem>>, %arg3: memref<32x32xbf16, #tpu.memory_space<vmem>>, %arg4: memref<1x1x32xf32, #tpu.memory_space<vmem>>, %arg5: memref<1x1x32xf32, #tpu.memory_space<vmem>>, %arg6: memref<1x9x32xf32, #tpu.memory_space<vmem>>) attributes {dimension_semantics = [#tpu.dimension_semantics<parallel>, #tpu.dimension_semantics<arbitrary>], iteration_bounds = array<i64: 2, 1>, scalar_prefetch = 0 : i64, scratch_operands = 0 : i64, tpu.core_type = #tpu.core_type<tc>, window_params = [{transform_indices = @transform_0, window_bounds = array<i64: 1, 4, 8, 8>}, {pipeline_mode = #tpu.pipeline_mode<synchronous>, transform_indices = @transform_1, window_bounds = array<i64: 32, 32>}, {transform_indices = @transform_2, window_bounds = array<i64: 1, 1, 32>}, {transform_indices = @transform_3, window_bounds = array<i64: 1, 1, 32>}, {transform_indices = @transform_4, window_bounds = array<i64: 1, 9, 32>}]} {
    %c0 = arith.constant 0 : index
    %c0_0 = arith.constant 0 : index
    %c0_1 = arith.constant 0 : index
    %c0_2 = arith.constant 0 : index
    %0 = vector.load %arg2[%c0, %c0_0, %c0_1, %c0_2] : memref<1x4x8x8xbf16, #tpu.memory_space<vmem>>, vector<1x1x8x8xbf16>
    %1 = vector.shape_cast %0 : vector<1x1x8x8xbf16> to vector<8x8xbf16>
    %c0_3 = arith.constant 0 : index
    %c1 = arith.constant 1 : index
    %c0_4 = arith.constant 0 : index
    %c0_5 = arith.constant 0 : index
    %2 = vector.load %arg2[%c0_3, %c1, %c0_4, %c0_5] : memref<1x4x8x8xbf16, #tpu.memory_space<vmem>>, vector<1x1x8x8xbf16>
    %3 = vector.shape_cast %2 : vector<1x1x8x8xbf16> to vector<8x8xbf16>
    %c0_6 = arith.constant 0 : index
    %c2 = arith.constant 2 : index
    %c0_7 = arith.constant 0 : index
    %c0_8 = arith.constant 0 : index
    %4 = vector.load %arg2[%c0_6, %c2, %c0_7, %c0_8] : memref<1x4x8x8xbf16, #tpu.memory_space<vmem>>, vector<1x1x8x8xbf16>
    %5 = vector.shape_cast %4 : vector<1x1x8x8xbf16> to vector<8x8xbf16>
    %c0_9 = arith.constant 0 : index
    %c3 = arith.constant 3 : index
    %c0_10 = arith.constant 0 : index
    %c0_11 = arith.constant 0 : index
    %6 = vector.load %arg2[%c0_9, %c3, %c0_10, %c0_11] : memref<1x4x8x8xbf16, #tpu.memory_space<vmem>>, vector<1x1x8x8xbf16>
    %7 = vector.shape_cast %6 : vector<1x1x8x8xbf16> to vector<8x8xbf16>
    %8 = tpu.concatenate %1, %3, %5, %7 in 1 : vector<8x8xbf16>, vector<8x8xbf16>, vector<8x8xbf16>, vector<8x8xbf16> -> vector<8x32xbf16>
    %c0_12 = arith.constant 0 : index
    %c0_13 = arith.constant 0 : index
    %9 = vector.load %arg3[%c0_12, %c0_13] : memref<32x32xbf16, #tpu.memory_space<vmem>>, vector<32x32xbf16>
    %cst = arith.constant dense<0.000000e+00> : vector<8x32xf32>
    %10 = tpu.matmul %8, %9, %cst {dimension_numbers = #tpu.dot_dimension_numbers<[1], [0], [0], [1], [0, 0, 1, 1], [], []>} : vector<8x32xbf16>, vector<32x32xbf16>, vector<8x32xf32> -> vector<8x32xf32>
    %c0_14 = arith.constant 0 : index
    %c0_15 = arith.constant 0 : index
    %c0_16 = arith.constant 0 : index
    %11 = vector.load %arg4[%c0_14, %c0_15, %c0_16] : memref<1x1x32xf32, #tpu.memory_space<vmem>>, vector<1x1x32xf32>
    %12 = vector.shape_cast %11 : vector<1x1x32xf32> to vector<1x32xf32>
    %13 = vector.broadcast %12 : vector<1x32xf32> to vector<8x32xf32>
    %14 = arith.addf %10, %13 : vector<8x32xf32>
    %c0_i32 = arith.constant 0 : i32
    %15 = arith.cmpi eq, %arg1, %c0_i32 : i32
    %16 = arith.extui %15 : i1 to i32
    %c0_i32_17 = arith.constant 0 : i32
    %17 = arith.cmpi ne, %16, %c0_i32_17 : i32
    scf.if %17 {
      %c0_20 = arith.constant 0 : index
      %c0_21 = arith.constant 0 : index
      %c0_22 = arith.constant 0 : index
      %24 = vector.load %arg5[%c0_20, %c0_21, %c0_22] : memref<1x1x32xf32, #tpu.memory_space<vmem>>, vector<1x1x32xf32>
      %25 = vector.shape_cast %24 : vector<1x1x32xf32> to vector<1x32xf32>
      %c0_23 = arith.constant 0 : index
      %c0_24 = arith.constant 0 : index
      %c0_25 = arith.constant 0 : index
      %26 = vector.load %arg6[%c0_23, %c0_24, %c0_25] : memref<1x9x32xf32, #tpu.memory_space<vmem>>, vector<1x1x32xf32>
      %27 = vector.shape_cast %26 : vector<1x1x32xf32> to vector<1x32xf32>
      %28 = vector.shape_cast %25 : vector<1x32xf32> to vector<1x1x32xf32>
      tpu.vector_store %arg6[%c0_23, %c0_24, %c0_25], %28 {strides = array<i32>} : memref<1x9x32xf32, #tpu.memory_space<vmem>>, vector<1x1x32xf32>,
    } else {
    }
    %c8_i32 = arith.constant 8 : i32
    %18 = arith.muli %arg1, %c8_i32 : i32
    %c1_i32 = arith.constant 1 : i32
    %19 = arith.addi %c1_i32, %18 : i32
    %c0_18 = arith.constant 0 : index
    %20 = arith.index_cast %19 : i32 to index
    %c0_19 = arith.constant 0 : index
    %21 = vector.load %arg6[%c0_18, %20, %c0_19] : memref<1x9x32xf32, #tpu.memory_space<vmem>>, vector<1x8x32xf32>
    %22 = vector.shape_cast %21 : vector<1x8x32xf32> to vector<8x32xf32>
    %23 = vector.shape_cast %14 : vector<8x32xf32> to vector<1x8x32xf32>
    tpu.vector_store %arg6[%c0_18, %20, %c0_19], %23 {strides = array<i32>} : memref<1x9x32xf32, #tpu.memory_space<vmem>>, vector<1x8x32xf32>,
    return
  }
  func.func @transform_0(%arg0: i32, %arg1: i32) -> (i32, i32, i32, i32) {
    %c0_i32 = arith.constant 0 : i32
    %c0_i32_0 = arith.constant 0 : i32
    %c0_i32_1 = arith.constant 0 : i32
    return %arg0, %c0_i32, %arg1, %c0_i32_0 : i32, i32, i32, i32
  }
  func.func @transform_1(%arg0: i32, %arg1: i32) -> (i32, i32) {
    %c0_i32 = arith.constant 0 : i32
    %c0_i32_0 = arith.constant 0 : i32
    %c0_i32_1 = arith.constant 0 : i32
    return %c0_i32, %c0_i32_0 : i32, i32
  }
  func.func @transform_2(%arg0: i32, %arg1: i32) -> (i32, i32, i32) {
    %c0_i32 = arith.constant 0 : i32
    %c0_i32_0 = arith.constant 0 : i32
    %c0_i32_1 = arith.constant 0 : i32
    return %arg0, %c0_i32, %c0_i32_0 : i32, i32, i32
  }
  func.func @transform_3(%arg0: i32, %arg1: i32) -> (i32, i32, i32) {
    %c0_i32 = arith.constant 0 : i32
    %c0_i32_0 = arith.constant 0 : i32
    %c0_i32_1 = arith.constant 0 : i32
    return %arg0, %c0_i32, %c0_i32_0 : i32, i32, i32
  }
  func.func @transform_4(%arg0: i32, %arg1: i32) -> (i32, i32, i32) {
    %c0_i32 = arith.constant 0 : i32
    %c0_i32_0 = arith.constant 0 : i32
    %c0_i32_1 = arith.constant 0 : i32
    return %arg0, %c0_i32, %c0_i32_0 : i32, i32, i32
  }
}

</mosaic_0001>

<bundles_post_ra>
// kernel: input_embedding.1
= control target key start
LH: loop header
LB: loop body
LE: loop exit
PB: predicated region body
PF: predicated region fallthrough
CT: control target
= control target key end

     0   :  { %s572_s15 = smov 0   ;;  %s574_s16 = smov 0   ;;  %s622_s0 = inlined_call_operand.vmem [shape: bf16[2,4,8,8], index: 0, kind: input, shape index: {}]   ;;  %s623_s1 = inlined_call_operand.vmem [shape: bf16[32,32], index: 1, kind: input, shape index: {}]   ;;  %s624_s2 = inlined_call_operand.vmem [shape: f32[2,1,32], index: 2, kind: input, shape index: {}]   ;;  %s625_s3 = inlined_call_operand.vmem [shape: f32[2,1,32], index: 3, kind: input, shape index: {}]   ;;  %s626_s4 = inlined_call_operand.vmem [shape: f32[2,9,32], index: 4, kind: output, shape index: {}]  }
   0x1   :  { %s576_s17 = smov 0  }
   0x2 LB: > { %s26_s18 = sadd.s32 1, %s536_s16  ;;  %p453_p0 = scmp.ge.s32.totalorder %s540_s17, 1  ;;  %s540_s17 = sphi %s576_s17, %s14_s17   ;;  %s536_s16 = sphi %s574_s16, %s628_s16   ;;  %s532_s15 = sphi %s572_s15, %s627_s15  }
   0x3   : > { %p28_p1 = scmp.ge.s32.totalorder %s26_s18, 2  ;;  %p195_p2 = scmp.lt.s32.totalorder %s540_s17, 3 }
   0x5   : > { %s630_s18 = smov (%p28_p1, %s26_s18), 0  ;;  %p196_p3 = pnand %p453_p0, %p195_p2 }
   0x6   : > { %p230_p4 = scmp.lt.s32.totalorder (!%p196_p3), %s532_s15, 1  ;;  %v516_v0 = vld [vmem:[%s623_s1] sm:$0xff] (!%p196_p3)   ;;  %v542_v1 = vmov (!%p196_p3), 0.0   ;;  %v517_v2 = vld [vmem:[%s623_s1 + $0x8] sm:$0xff] (!%p196_p3)   ;;  %vm543_vm0 = vmmov (!%p196_p3), 0   ;;  %s544_s27 = smov (!%p196_p3), 8  }
   0x7   : > { %199 = sbr.rel (%p196_p3) target bundleno = 354 (0x162), region = 36  ;;  %476 = vmatprep.subr.bf16.mxu0 (!%p196_p3), %v542_v1  ;;  %480 = vmatprep.mubr.msk.bf16.mxu0 (!%p196_p3), %vm543_vm0, %v542_v1  ;;  %s545_s28 = smov (!%p196_p3), 24   ;;  %vm272_vm1 = vcmask (!%p196_p3), 64512   ;;  %vm276_vm2 = vcmask (!%p196_p3), 130048   ;;  %vm279_vm3 = vcmask (!%p196_p3), 195584   ;;  %vm305_vm4 = vcmask (!%p196_p3), 261120  }
   0x8   : > { %477 = vmatpush3.bf16.msra.mxu0 (!%p196_p3), %v516_v0  ;;  %s546_s29 = smov (!%p196_p3), 16   ;;  %vm353_vm5 = vcmask (!%p196_p3), 253952  }
   0x9   : > { %478 = vmatprep.subr.bf16.mxu0 (!%p196_p3), %v542_v1 }
   0xc   : > { %479 = vmatpush3.bf16.msra.mxu0 (!%p196_p3), %v517_v2 }
   0xe   : > { %s632_s15 = smov (!%p230_p4, %s532_s15), 1 }
   0xf   : > { %s471_s23 = sshll.u32 %s632_s15, 4  ;;  %s243_s6 = scalar_lea.vmem %s625_s3, %s632_s15 }
  0x10   : > { %s237_s26 = scalar_lea.vmem %s622_s0, %s471_s23  ;;  %s248_s9 = scalar_lea.vmem %s626_s4, %s471_s23  ;;  %v352_v13 = vld [vmem:[%s243_s6] sm:$0x1] }
  0x11   : > { %v513_v3 = vld [vmem:[%s237_s26 + $0x4] ss:$0 sps:$4 sm:$0xff]   ;;  %v515_v4 = vld [vmem:[%s237_s26 + $0xc] ss:$0 sps:$4 sm:$0xff]   ;;  %v514_v5 = vld [vmem:[%s237_s26 + $0x8] ss:$0 sps:$4 sm:$0xff]   ;;  %s240_s12 = scalar_lea.vmem %s624_s2, %s632_s15 }
  0x12   : > { %260 = vrot.lane.b32.xlu0 %v513_v3, %s544_s27  ;;  %270 = vrot.lane.b32.xlu1 %v515_v4, %s545_s28  ;;  %v250_v7 = vld [vmem:[%s237_s26] sm:$0xf]  ;;  %354 = vst.msk [vmem:[%s248_s9] sm:$0x1] %vm353_vm5, %v352_v13 }
  0x13   : > { %v464_v14 = vld [vmem:[%s240_s12] ss:$0 sm:$0xff] }
  0x16   : > { %265 = vrot.lane.b32.xlu0 %v514_v5, %s546_s29 }
  0x84   : > { %v261_v6 = vpop.permute.xlu0 %260  ;;  %v271_v8 = vpop.permute.xlu1 %270 }
  0x85   : > { %v275_v9 = vsel %vm272_vm1, %v250_v7, %v261_v6 }
  0x88   : > { %v266_v10 = vpop.permute.xlu0 %265 }
  0x89   : > { %v278_v11 = vsel %vm276_vm2, %v275_v9, %v266_v10 }
  0x8a   : > { %v281_v12 = vsel %vm279_vm3, %v278_v11, %v271_v8 }
  0x8b   : > { %481 = vmatmul.mubr.msk.bf16.vlgmr.msra.gmra.mrb[0].mxu0 %vm305_vm4, %v281_v12 }
 0x15e   : > { %v342_v15 = vpop.f32.mrb[0].mxu0 }
 0x15f   : > { %v343_v16 = vadd.f32 %v464_v14, %v342_v15  ;;  %v482_v17 = vpop.f32.mrb[1].mxu0 }
 0x160   : > { %v345_v18 = vpop.f32.mrb[2].mxu0 }
 0x161   : > { %468 = vst.msk [vmem:[%s248_s9 + $0x1] sm:$0xff] %vm305_vm4, %v343_v16  ;;  %v483_v19 = vpop.f32.mrb[3].mxu0 }
 0x162 PF: > { %s14_s17 = sadd.s32 1, %s540_s17   ;;  %s627_s15 = smov %s536_s16 }
 0x163   : > { %p11_p5 = scmp.ge.s32.totalorder %s14_s17, 4   ;;  %s628_s16 = smov %s630_s18 }
 0x165   :  { %13 = sbr.rel (!%p11_p5) target bundleno = 2 (0x2), region = 80 }

</bundles_post_ra>
